<compile_context>
chip_gen: v5e
topology: v5e:2x2
jax: 0.10.0
libtpu: 0.0.40
codegen_flags: <defaults>
</compile_context>

<pallas_src>
import math

import jax
import jax.numpy as jnp
from jax.experimental import pallas as pl
from jax.experimental.pallas import tpu as pltpu

NUM_CLASSES = 6
GAMMA = 0                      # module default
LABEL_WEIGHT = (1, 1, 1, 1, 1, 1)
EPS = math.exp(-12)            # matches np.exp(-12) in the PyTorch module
MAX_TILE = 32768               # lane-dense pixel tile (multiple of 128)


def _make_kernel(tile, pixels_per_image):
    """Builds the kernel with static tile size / per-image pixel count."""

    def kernel(logits_ref, target_ref, out_ref, acc_ref):
        j = pl.program_id(1)

        @pl.when(j == 0)
        def _():
            acc_ref[...] = jnp.zeros_like(acc_ref)

        x = logits_ref[...]                                   # (C, T) f32
        t = target_ref[...]                                   # (1, T) i32

        # Mask lanes past the true pixel count (possibly partial last tile).
        lane = jax.lax.broadcasted_iota(jnp.int32, (1, tile), 1)
        valid = (j * tile + lane) < pixels_per_image          # (1, T) bool
        x = jnp.where(valid, x, 0.0)                          # keep garbage lanes finite

        # Numerically-stable softmax over the class axis (axis 0).
        m = jnp.max(x, axis=0, keepdims=True)
        e = jnp.exp(x - m)
        denom = jnp.sum(e, axis=0, keepdims=True)             # (1, T)
        p = e * pl.reciprocal(denom, approx=False)            # (C, T)

        cls = jax.lax.broadcasted_iota(jnp.int32, p.shape, 0)
        onehot = (t == cls)                                    # (C, T) bool, exactly one-hot

        # fl = -t*(1-p)^g*log(p+eps) - (1-t)*p^g*log(1-p+eps), with t in {0,1}:
        arg = jnp.where(onehot, p, 1.0 - p) + EPS
        if GAMMA == 0:
            fl = -jnp.log(arg)
        else:
            fac = jnp.where(onehot, (1.0 - p) ** GAMMA, p ** GAMMA)
            fl = -fac * jnp.log(arg)

        # Lane-dense VPU accumulation; cross-lane reduce only at the end.
        acc_ref[...] += jnp.where(valid, fl, 0.0)

        @pl.when(j == pl.num_programs(1) - 1)
        def _():
            out_ref[...] = jnp.sum(acc_ref[...], axis=1, keepdims=True)   # (C, 1)

    return kernel


def multi_label_focal_loss(inputs, target):
    """inputs: (N, C, D, H, W) float32 logits; target: (N, D, H, W) int class ids."""
    N, C, D, H, W = inputs.shape
    assert C == NUM_CLASSES
    P = D * H * W

    # Free reshapes of the native contiguous layout (no transpose, no pad).
    logits = inputs.reshape(N, C, P)
    tgt = target.reshape(N, 1, P).astype(jnp.int32)

    # Tile: full pixel axis if small (block == full dim is always legal),
    # otherwise a large 128-aligned tile; partial last tile is masked in-kernel.
    T = P if P <= MAX_TILE else MAX_TILE
    J = pl.cdiv(P, T)

    per_class_sums = pl.pallas_call(
        _make_kernel(T, P),
        out_shape=jax.ShapeDtypeStruct((N, C, 1), jnp.float32),
        grid_spec=pltpu.PrefetchScalarGridSpec(
            num_scalar_prefetch=0,
            grid=(N, J),
            in_specs=[
                pl.BlockSpec((None, C, T), lambda n, j: (n, 0, j)),
                pl.BlockSpec((None, 1, T), lambda n, j: (n, 0, j)),
            ],
            out_specs=pl.BlockSpec((None, C, 1), lambda n, j: (n, 0, 0)),
            scratch_shapes=[pltpu.VMEM((C, T), jnp.float32)],
        ),
        compiler_params=pltpu.CompilerParams(
            dimension_semantics=("parallel", "arbitrary")),
    )(logits, tgt)

    # Tiny final combine in plain JAX: per-class means, label weights, / count.
    per_class_sum = per_class_sums.reshape(N, C).sum(axis=0)       # (C,)
    per_class_mean = per_class_sum / jnp.float32(N * P)
    w = jnp.asarray(LABEL_WEIGHT, jnp.float32)
    count = sum(1 for lw in LABEL_WEIGHT if lw != 0) or 1
    return jnp.sum(w * per_class_mean) / jnp.float32(count)


def _reference(inputs, target):
    """Pure-JAX reference mirroring the PyTorch MultiLabel_Focal_loss exactly."""
    onehot = jax.nn.one_hot(target, NUM_CLASSES, dtype=jnp.float32)   # (N,D,H,W,C)
    onehot = jnp.transpose(onehot, (0, 4, 1, 2, 3))                   # (N,C,D,H,W)
    probs = jax.nn.softmax(inputs, axis=1)
    total = 0.0
    count = 0
    for i in range(NUM_CLASSES):
        p = probs[:, i]
        t = onehot[:, i]
        fl = (-t * (1.0 - p) ** GAMMA * jnp.log(p + EPS)
              - (1.0 - t) * p ** GAMMA * jnp.log(1.0 - p + EPS))
        fl_mean = fl.mean()
        if LABEL_WEIGHT[i] != 0:
            total = total + LABEL_WEIGHT[i] * fl_mean
            count += 1
    if count == 0:
        count = 1
    return total / count


if __name__ == "__main__":
    key = jax.random.PRNGKey(0)
    k1, k2 = jax.random.split(key)
    N, C, D, H, W = 2, NUM_CLASSES, 4, 8, 8
    inputs = jax.random.normal(k1, (N, C, D, H, W), dtype=jnp.float32)
    target = jax.random.randint(k2, (N, D, H, W), 0, NUM_CLASSES, dtype=jnp.int32)

    loss = multi_label_focal_loss(inputs, target)
    jax.block_until_ready(loss)

    ref = _reference(inputs, target)
    assert jnp.allclose(loss, ref, atol=1e-5, rtol=1e-5), (loss, ref)
    print("KERNEL_OK")
</pallas_src>

<mosaic_0001>
module attributes {stable_mosaic.version = 11 : i64} {
  func.func @kernel(%arg0: i32, %arg1: i32, %arg2: memref<1x6x256xf32, #tpu.memory_space<vmem>>, %arg3: memref<1x1x256xi32, #tpu.memory_space<vmem>>, %arg4: memref<1x6x1xf32, #tpu.memory_space<vmem>>, %arg5: memref<6x256xf32, #tpu.memory_space<vmem>>) attributes {dimension_semantics = [#tpu.dimension_semantics<parallel>, #tpu.dimension_semantics<arbitrary>], iteration_bounds = array<i64: 2, 1>, scalar_prefetch = 0 : i64, scratch_operands = 1 : i64, tpu.core_type = #tpu.core_type<tc>, window_params = [{transform_indices = @transform_0, window_bounds = array<i64: 1, 6, 256>}, {transform_indices = @transform_1, window_bounds = array<i64: 1, 1, 256>}, {transform_indices = @transform_2, window_bounds = array<i64: 1, 6, 1>}]} {
    %c0_i32 = arith.constant 0 : i32
    %0 = arith.cmpi eq, %arg1, %c0_i32 : i32
    %1 = arith.extui %0 : i1 to i32
    %c0_i32_0 = arith.constant 0 : i32
    %2 = arith.cmpi ne, %1, %c0_i32_0 : i32
    scf.if %2 {
      %cst_19 = arith.constant 0.000000e+00 : f32
      %48 = vector.broadcast %cst_19 : f32 to vector<6x256xf32>
      %c0_20 = arith.constant 0 : index
      %c0_21 = arith.constant 0 : index
      %49 = vector.load %arg5[%c0_20, %c0_21] : memref<6x256xf32, #tpu.memory_space<vmem>>, vector<6x256xf32>
      tpu.vector_store %arg5[%c0_20, %c0_21], %48 {strides = array<i32>} : memref<6x256xf32, #tpu.memory_space<vmem>>, vector<6x256xf32>,
    } else {
    }
    %c0 = arith.constant 0 : index
    %c0_1 = arith.constant 0 : index
    %c0_2 = arith.constant 0 : index
    %3 = vector.load %arg2[%c0, %c0_1, %c0_2] : memref<1x6x256xf32, #tpu.memory_space<vmem>>, vector<1x6x256xf32>
    %4 = vector.shape_cast %3 : vector<1x6x256xf32> to vector<6x256xf32>
    %c0_3 = arith.constant 0 : index
    %c0_4 = arith.constant 0 : index
    %c0_5 = arith.constant 0 : index
    %5 = vector.load %arg3[%c0_3, %c0_4, %c0_5] : memref<1x1x256xi32, #tpu.memory_space<vmem>>, vector<1x1x256xi32>
    %6 = vector.shape_cast %5 : vector<1x1x256xi32> to vector<1x256xi32>
    %7 = tpu.iota {dimensions = array<i32: 1>} : vector<1x256xi32>
    %c256_i32 = arith.constant 256 : i32
    %8 = arith.muli %arg1, %c256_i32 : i32
    %9 = vector.broadcast %8 : i32 to vector<1x256xi32>
    %10 = arith.addi %9, %7 : vector<1x256xi32>
    %c256_i32_6 = arith.constant 256 : i32
    %11 = vector.broadcast %c256_i32_6 : i32 to vector<1x256xi32>
    %12 = arith.cmpi slt, %10, %11 : vector<1x256xi32>
    %cst = arith.constant 0.000000e+00 : f32
    %13 = vector.shape_cast %12 : vector<1x256xi1> to vector<1x256xi1>
    %14 = vector.broadcast %13 : vector<1x256xi1> to vector<6x256xi1>
    %15 = vector.broadcast %cst : f32 to vector<6x256xf32>
    %16 = arith.select %14, %4, %15 : vector<6x256xi1>, vector<6x256xf32>
    %cst_7 = arith.constant dense<0xFF800000> : vector<256xf32>
    %17 = vector.multi_reduction <maximumf>, %16, %cst_7 [0] : vector<6x256xf32> to vector<256xf32>
    %18 = vector.shape_cast %17 : vector<256xf32> to vector<1x256xf32>
    %19 = vector.broadcast %18 : vector<1x256xf32> to vector<6x256xf32>
    %20 = arith.subf %16, %19 : vector<6x256xf32>
    %21 = math.exp %20 : vector<6x256xf32>
    %cst_8 = arith.constant dense<0.000000e+00> : vector<256xf32>
    %22 = vector.multi_reduction <add>, %21, %cst_8 [0] : vector<6x256xf32> to vector<256xf32>
    %23 = vector.shape_cast %22 : vector<256xf32> to vector<1x256xf32>
    %24 = tpu.reciprocal %23 : vector<1x256xf32> -> vector<1x256xf32>
    %25 = vector.broadcast %24 : vector<1x256xf32> to vector<6x256xf32>
    %26 = arith.mulf %21, %25 : vector<6x256xf32>
    %27 = tpu.iota {dimensions = array<i32: 0>} : vector<6x256xi32>
    %28 = vector.broadcast %6 : vector<1x256xi32> to vector<6x256xi32>
    %29 = arith.cmpi eq, %28, %27 : vector<6x256xi32>
    %cst_9 = arith.constant 1.000000e+00 : f32
    %30 = vector.broadcast %cst_9 : f32 to vector<6x256xf32>
    %31 = arith.subf %30, %26 : vector<6x256xf32>
    %32 = arith.select %29, %26, %31 : vector<6x256xi1>, vector<6x256xf32>
    %cst_10 = arith.constant 6.14421242E-6 : f32
    %33 = vector.broadcast %cst_10 : f32 to vector<6x256xf32>
    %34 = arith.addf %32, %33 : vector<6x256xf32>
    %35 = math.log %34 : vector<6x256xf32>
    %cst_11 = arith.constant 0.000000e+00 : f32
    %36 = vector.broadcast %cst_11 : f32 to vector<6x256xf32>
    %37 = arith.subf %36, %35 : vector<6x256xf32>
    %c0_12 = arith.constant 0 : index
    %c0_13 = arith.constant 0 : index
    %38 = vector.load %arg5[%c0_12, %c0_13] : memref<6x256xf32, #tpu.memory_space<vmem>>, vector<6x256xf32>
    %cst_14 = arith.constant 0.000000e+00 : f32
    %39 = vector.shape_cast %12 : vector<1x256xi1> to vector<1x256xi1>
    %40 = vector.broadcast %39 : vector<1x256xi1> to vector<6x256xi1>
    %41 = vector.broadcast %cst_14 : f32 to vector<6x256xf32>
    %42 = arith.select %40, %37, %41 : vector<6x256xi1>, vector<6x256xf32>
    %43 = arith.addf %38, %42 : vector<6x256xf32>
    %c0_15 = arith.constant 0 : index
    %c0_16 = arith.constant 0 : index
    %44 = vector.load %arg5[%c0_15, %c0_16] : memref<6x256xf32, #tpu.memory_space<vmem>>, vector<6x256xf32>
    tpu.vector_store %arg5[%c0_15, %c0_16], %43 {strides = array<i32>} : memref<6x256xf32, #tpu.memory_space<vmem>>, vector<6x256xf32>,
    %c0_i32_17 = arith.constant 0 : i32
    %45 = arith.cmpi eq, %arg1, %c0_i32_17 : i32
    %46 = arith.extui %45 : i1 to i32
    %c0_i32_18 = arith.constant 0 : i32
    %47 = arith.cmpi ne, %46, %c0_i32_18 : i32
    scf.if %47 {
      %c0_19 = arith.constant 0 : index
      %c0_20 = arith.constant 0 : index
      %48 = vector.load %arg5[%c0_19, %c0_20] : memref<6x256xf32, #tpu.memory_space<vmem>>, vector<6x256xf32>
      %cst_21 = arith.constant dense<0.000000e+00> : vector<6xf32>
      %49 = vector.multi_reduction <add>, %48, %cst_21 [1] : vector<6x256xf32> to vector<6xf32>
      %50 = vector.shape_cast %49 : vector<6xf32> to vector<6x1xf32>
      %c0_22 = arith.constant 0 : index
      %c0_23 = arith.constant 0 : index
      %c0_24 = arith.constant 0 : index
      %51 = vector.load %arg4[%c0_22, %c0_23, %c0_24] : memref<1x6x1xf32, #tpu.memory_space<vmem>>, vector<1x6x1xf32>
      %52 = vector.shape_cast %51 : vector<1x6x1xf32> to vector<6x1xf32>
      %53 = vector.shape_cast %50 : vector<6x1xf32> to vector<1x6x1xf32>
      tpu.vector_store %arg4[%c0_22, %c0_23, %c0_24], %53 {strides = array<i32>} : memref<1x6x1xf32, #tpu.memory_space<vmem>>, vector<1x6x1xf32>,
    } else {
    }
    return
  }
  func.func @transform_0(%arg0: i32, %arg1: i32) -> (i32, i32, i32) {
    %c0_i32 = arith.constant 0 : i32
    %c0_i32_0 = arith.constant 0 : i32
    return %arg0, %c0_i32, %arg1 : i32, i32, i32
  }
  func.func @transform_1(%arg0: i32, %arg1: i32) -> (i32, i32, i32) {
    %c0_i32 = arith.constant 0 : i32
    %c0_i32_0 = arith.constant 0 : i32
    return %arg0, %c0_i32, %arg1 : i32, i32, i32
  }
  func.func @transform_2(%arg0: i32, %arg1: i32) -> (i32, i32, i32) {
    %c0_i32 = arith.constant 0 : i32
    %c0_i32_0 = arith.constant 0 : i32
    %c0_i32_1 = arith.constant 0 : i32
    return %arg0, %c0_i32, %c0_i32_0 : i32, i32, i32
  }
}

</mosaic_0001>

<bundles_post_ra>
// kernel: tpu_custom_call.1
= control target key start
LH: loop header
LB: loop body
LE: loop exit
PB: predicated region body
PF: predicated region fallthrough
CT: control target
= control target key end

     0   :  { %s501_s9 = smov 0   ;;  %s503_s10 = smov 0   ;;  %s548_s0 = inlined_call_operand.vmem [shape: f32[2,6,256], index: 0, kind: input, shape index: {}]   ;;  %s549_s1 = inlined_call_operand.vmem [shape: s32[2,1,256], index: 1, kind: input, shape index: {}]   ;;  %s550_s2 = inlined_call_operand.vmem [shape: f32[2,6,1], index: 2, kind: output, shape index: {}]  }
   0x1   :  { %s505_s11 = smov 0  }
   0x2 LB: > { %s24_s12 = sadd.s32 1, %s479_s10  ;;  %p416_p0 = scmp.ge.s32.totalorder %s483_s11, 1  ;;  %s483_s11 = sphi %s505_s11, %s12_s11   ;;  %s479_s10 = sphi %s503_s10, %s552_s10   ;;  %s475_s9 = sphi %s501_s9, %s551_s9  }
   0x3   : > { %p26_p1 = scmp.ge.s32.totalorder %s24_s12, 2  ;;  %p147_p2 = scmp.lt.s32.totalorder %s483_s11, 3 }
   0x5   : > { %s554_s12 = smov (%p26_p1, %s24_s12), 0  ;;  %p148_p3 = pnand %p416_p0, %p147_p2 }
   0x6   : > { %p181_p4 = scmp.lt.s32.totalorder (!%p148_p3), %s475_s9, 1 }
   0x7   : > { %151 = sbr.rel (%p148_p3) target bundleno = 219 (0xdb), region = 28 }
   0xc   : > { %v485_v0 = vmov 0.0   ;;  %s556_s9 = smov (!%p181_p4, %s475_s9), 1  ;;  %vm227_vm0 = vcmask 1045504   ;;  %v292_v42 = vlaneseq  ;;  %vm328_vm11 = vcmask 5120  }
   0xd   : > { %207 = vst [vmem:[#allocation2] sm:$0x3f] %v485_v0  ;;  %s423_s13 = sshll.u32 %s556_s9, 4  ;;  %s419_s17 = sshll.u32 %s556_s9, 1 }
   0xe   : > { %208 = vst [vmem:[#allocation2 + $0x8] sm:$0x3f] %v485_v0  ;;  %s188_s16 = scalar_lea.vmem %s548_s0, %s423_s13  ;;  %s197_s20 = scalar_lea.vmem %s549_s1, %s419_s17  ;;  %v293_v55 = vshrl.u32 %v292_v42, 7 }
   0xf   : > { %v209_v1 = vld [vmem:[%s188_s16] sm:$0x3f]  ;;  %v210_v2 = vld [vmem:[%s188_s16 + $0x8] sm:$0x3f]  ;;  %s420_s21 = sshll.u32 %s556_s9, 3 }
  0x10   : > { %v228_v3 = vsel %vm227_vm0, %v209_v1, -inf  ;;  %v235_v4 = vsel %vm227_vm0, %v210_v2, -inf  ;;  %v211_v48 = vld [vmem:[%s197_s20] sm:$0x3]  ;;  %s202_s24 = scalar_lea.vmem %s550_s2, %s420_s21 }
  0x11   : > { %v229_v5 = vrot.slane %v228_v3, 4  ;;  %v236_v6 = vrot.slane %v235_v4, 4  ;;  %v294_v56 = vperm.slane %v211_v48, 0  ;;  %v295_v58 = vperm.slane %v211_v48, 1 }
  0x13   : > { %v230_v7 = vmax.f32 %v228_v3, %v229_v5  ;;  %v237_v8 = vmax.f32 %v235_v4, %v236_v6  ;;  %vm296_vm9 = vcmp.eq.s32.totalorder %v294_v56, %v293_v55  ;;  %vm297_vm10 = vcmp.eq.s32.totalorder %v295_v58, %v293_v55 }
  0x15   : > { %v231_v9 = vrot.slane %v230_v7, 2  ;;  %v238_v10 = vrot.slane %v237_v8, 2 }
  0x17   : > { %v232_v11 = vmax.f32 %v230_v7, %v231_v9  ;;  %v239_v12 = vmax.f32 %v237_v8, %v238_v10  ;;  %v310_v10 = vld [vmem:[#allocation2] sm:$0x3f] }
  0x19   : > { %v233_v13 = vrot.slane %v232_v11, 1  ;;  %v240_v14 = vrot.slane %v239_v12, 1 }
  0x1b   : > { %v234_v15 = vmax.f32 %v232_v11, %v233_v13  ;;  %v241_v16 = vmax.f32 %v239_v12, %v240_v14  ;;  %v311_v12 = vld [vmem:[#allocation2 + $0x8] sm:$0x3f] }
  0x1d   : > { %v242_v17 = vsub.f32 %v209_v1, %v234_v15  ;;  %v243_v18 = vsub.f32 %v210_v2, %v241_v16 }
  0x1f   : > { %v244_v19 = vmul.f32 1.442695, %v242_v17  ;;  %v246_v20 = vmul.f32 1.442695, %v243_v18 }
  0x21   : > { %449 = vpow2.f32 %v244_v19 }
  0x22   : > { %451 = vpow2.f32 %v246_v20 }
  0x27   : > { %v450_v21 = vpop.eup %449 }
  0x28   : > { %v452_v22 = vpop.eup %451  ;;  %v248_v23 = vsel %vm227_vm0, %v450_v21, 0.0 }
  0x29   : > { %v249_v24 = vrot.slane %v248_v23, 4  ;;  %v255_v25 = vsel %vm227_vm0, %v452_v22, 0.0 }
  0x2a   : > { %v256_v26 = vrot.slane %v255_v25, 4 }
  0x2b   : > { %v250_v27 = vadd.f32 %v249_v24, %v248_v23 }
  0x2c   : > { %v257_v28 = vadd.f32 %v256_v26, %v255_v25 }
  0x2d   : > { %v251_v29 = vrot.slane %v250_v27, 2 }
  0x2e   : > { %v258_v30 = vrot.slane %v257_v28, 2 }
  0x2f   : > { %v252_v31 = vadd.f32 %v251_v29, %v250_v27 }
  0x30   : > { %v259_v32 = vadd.f32 %v258_v30, %v257_v28 }
  0x31   : > { %v253_v33 = vrot.slane %v252_v31, 1 }
  0x32   : > { %v260_v34 = vrot.slane %v259_v32, 1 }
  0x33   : > { %v254_v35 = vadd.f32 %v253_v33, %v252_v31 }
  0x34   : > { %v261_v36 = vadd.f32 %v260_v34, %v259_v32 }
  0x35   : > { %453 = vrcp.f32 %v254_v35  ;;  %vm267_vm1 = vweird.f32 %v254_v35  ;;  %v273_v40 = vand.u32 2147483648, %v254_v35  ;;  %v271_v44 = vand.u32 2147483647, %v254_v35 }
  0x36   : > { %455 = vrcp.f32 %v261_v36  ;;  %v287_v45 = vand.u32 2147483648, %v261_v36  ;;  %vm281_vm3 = vweird.f32 %v261_v36  ;;  %v285_v47 = vand.u32 2147483647, %v261_v36 }
  0x37   : > { %v274_v50 = vor.u32 1.1754944e-38, %v273_v40  ;;  %vm272_vm6 = vcmp.eq.f32.partialorder %v271_v44, 8.507059e+37 }
  0x38   : > { %v288_v53 = vor.u32 1.1754944e-38, %v287_v45  ;;  %vm286_vm8 = vcmp.eq.f32.partialorder %v285_v47, 8.507059e+37 }
  0x3b   : > { %v454_v37 = vpop.eup %453 }
  0x3c   : > { %v456_v38 = vpop.eup %455  ;;  %v263_v39 = vmul.f32 %v454_v37, %v254_v35  ;;  %vm268_vm2 = vweird.f32 %v454_v37 }
  0x3d   : > { %v277_v41 = vmul.f32 %v456_v38, %v261_v36  ;;  %vm282_vm4 = vweird.f32 %v456_v38  ;;  %vm269_vm5 = vmor %vm267_vm1, %vm268_vm2 }
  0x3e   : > { %v264_v43 = vsub.f32 1.0, %v263_v39  ;;  %vm283_vm7 = vmor %vm281_vm3, %vm282_vm4 }
  0x3f   : > { %v278_v46 = vsub.f32 1.0, %v277_v41 }
  0x40   : > { %v265_v49 = vmul.f32 %v454_v37, %v264_v43 }
  0x41   : > { %v279_v51 = vmul.f32 %v456_v38, %v278_v46 }
  0x42   : > { %v266_v52 = vadd.f32 %v454_v37, %v265_v49 }
  0x43   : > { %v280_v54 = vadd.f32 %v456_v38, %v279_v51 }
  0x44   : > { %v270_v57 = vsel %vm269_vm5, %v454_v37, %v266_v52 }
  0x45   : > { %v275_v59 = vsel %vm272_vm6, %v274_v50, %v270_v57  ;;  %v284_v60 = vsel %vm283_vm7, %v456_v38, %v280_v54 }
  0x46   : > { %v289_v61 = vsel %vm286_vm8, %v288_v53, %v284_v60  ;;  %v290_v62 = vmul.f32 %v450_v21, %v275_v59 }
  0x47   : > { %v291_v63 = vmul.f32 %v452_v22, %v289_v61 }
  0x48   : > { %v298_v0 = vsub.f32 1.0, %v290_v62 }
  0x49   : > { %v299_v1 = vsub.f32 1.0, %v291_v63 }
  0x4a   : > { %v300_v2 = vsel %vm296_vm9, %v290_v62, %v298_v0 }
  0x4b   : > { %v301_v3 = vsel %vm297_vm10, %v291_v63, %v299_v1  ;;  %v302_v4 = vadd.f32 6.1442124e-06, %v300_v2 }
  0x4c   : > { %v303_v5 = vadd.f32 6.1442124e-06, %v301_v3 }
  0x4d   : > { %457 = vlog2.f32 %v302_v4 }
  0x4e   : > { %459 = vlog2.f32 %v303_v5 }
  0x53   : > { %v458_v6 = vpop.eup %457 }
  0x54   : > { %v460_v7 = vpop.eup %459  ;;  %v305_v8 = vmul.f32 0.6931472, %v458_v6 }
  0x55   : > { %v307_v9 = vmul.f32 0.6931472, %v460_v7 }
  0x56   : > { %v308_v11 = vsub.f32 0.0, %v305_v8 }
  0x57   : > { %v309_v13 = vsub.f32 0.0, %v307_v9 }
  0x58   : > { %v314_v14 = vadd.f32 %v310_v10, %v308_v11 }
  0x59   : > { %v315_v15 = vadd.f32 %v311_v12, %v309_v13 }
  0x5a   : > { %316 = vst [vmem:[#allocation2] sm:$0x3f] %v314_v14 }
  0x5b   : > { %317 = vst [vmem:[#allocation2 + $0x8] sm:$0x3f] %v315_v15 }
  0x61   : > { %v321_v16 = vld [vmem:[#allocation2] sm:$0x3f] }
  0x62   : > { %v322_v17 = vld [vmem:[#allocation2 + $0x8] sm:$0x3f]  ;;  %v323_v18 = vsel %vm227_vm0, %v321_v16, 0.0 }
  0x63   : > { %v324_v19 = vsel %vm227_vm0, %v322_v17, 0.0 }
  0x64   : > { %v325_v20 = vadd.f32 %v324_v19, %v323_v18 }
  0x66   : > { %326 = vadd.xlane.f32.xlu0 %v325_v20 }
  0xd9   : > { %v327_v21 = vpop.xlane.xlu0 %326 }
  0xda   : > { %329 = vst.msk [vmem:[%s202_s24] sm:$0x3f] %vm328_vm11, %v327_v21 }
  0xdb PF: > { %s12_s11 = sadd.s32 1, %s483_s11   ;;  %s551_s9 = smov %s479_s10 }
  0xdc   : > { %p9_p5 = scmp.ge.s32.totalorder %s12_s11, 4   ;;  %s552_s10 = smov %s554_s12 }
  0xde   :  { %11 = sbr.rel (!%p9_p5) target bundleno = 2 (0x2), region = 69 }

</bundles_post_ra>
